<compile_context>
chip_gen: v5e
topology: v5e:2x2
jax: 0.10.0
libtpu: 0.0.40
codegen_flags: <defaults>
</compile_context>

<pallas_src>
import jax
import jax.numpy as jnp
from jax.experimental import pallas as pl
from jax.experimental.pallas import tpu as pltpu

MINUS = -100.0  # self._minus in the PyTorch module


def _conv_taps_matmul(x_ref, w_ref):
    """Conv1d(k=3, pad=1), NO bias, as a single im2col MXU matmul.

    x_ref: (TB, L, C) channels-last tile.
    w_ref: (3*C, H), rows ordered tap-major (k, c).
    Returns an f32 (TB, L, H) conv output.
    """
    TB, L, C = x_ref.shape
    H = w_ref.shape[1]
    x = x_ref[...]                                       # native dtype
    zero = jnp.zeros((TB, 1, C), x.dtype)
    x_m1 = jnp.concatenate([zero, x[:, :L - 1, :]], axis=1)   # x[l-1], zero halo
    x_p1 = jnp.concatenate([x[:, 1:, :], zero], axis=1)       # x[l+1], zero halo
    x_cat = jnp.concatenate([x_m1, x, x_p1], axis=-1)         # (TB, L, 3C)
    x2d = x_cat.reshape(TB * L, 3 * C)                        # big-M 2-D matmul
    y = jnp.dot(x2d, w_ref[...], preferred_element_type=jnp.float32)
    return y.reshape(TB, L, H)


def cnn_maxpool_kernel(x_ref, w_ref, b_ref, o_ref):
    """forward(input, mask=None): max_l relu(conv(x)_l + b).

    relu is monotone and the bias is constant over L, so
      max_l relu(conv_l + b) == relu(max_l conv_l + b)
    which lets us pool the bias-free conv and apply bias+relu on (TB, H) only.
    """
    y = _conv_taps_matmul(x_ref, w_ref)                  # (TB, L, H) f32
    pooled = jnp.max(y, axis=1)                          # (TB, H)
    pooled = pooled + b_ref[...].astype(jnp.float32)     # (1, H) broadcasts
    o_ref[...] = jnp.maximum(pooled, 0.0).astype(o_ref.dtype)  # one dense store


def cnn_piecewise_kernel(x_ref, w_ref, b_ref, m_ref, o_ref):
    """forward(input, mask): piece-wise max pooling over 3 mask segments.

    pool_p = max_l relu(relu(conv_l + b) + MINUS * mask[p, l])
           = relu(max_l (relu(conv_l + b) + MINUS * mask[p, l]))   (relu monotone)
    """
    y = _conv_taps_matmul(x_ref, w_ref)                  # (TB, L, H) f32
    y = jnp.maximum(y + b_ref[...].astype(jnp.float32), 0.0)      # relu(conv + b)
    m = m_ref[...].astype(jnp.float32)                   # (TB, 3, L)
    pools = []
    for p in range(3):                                   # static unroll, 3 pieces
        mp = m[:, p, :][:, :, None]                      # (TB, L, 1)
        pools.append(jnp.max(y + MINUS * mp, axis=1))    # (TB, H)
    out = jnp.maximum(jnp.concatenate(pools, axis=-1), 0.0)        # (TB, 3H)
    o_ref[...] = out.astype(o_ref.dtype)                 # single lane-dense store


def _pick_batch_tile(B, L, C, H, itemsize):
    """Batch-tile size bounded by a conservative VMEM budget (fits v7x 64 MiB)."""
    per_row = (2 * L * C * itemsize      # x tile, double-buffered
               + 4 * L * 3 * C           # im2col copy (f32-bound)
               + 4 * L * H               # conv intermediate (f32)
               + 3 * L * itemsize)       # mask tile
    budget = 8 * 1024 * 1024
    tb = max(1, budget // max(per_row, 1))
    if tb >= B:
        return B
    return max(8, (tb // 8) * 8)         # keep output (TB, H) block sublane-aligned


def cnn_forward(x_ncl, weight, bias, mask=None):
    """x_ncl: (B, C_in, L) like PyTorch.  weight: (H, C_in, 3).  bias: (H,)."""
    B, C, L = x_ncl.shape
    H = weight.shape[0]

    x = jnp.transpose(x_ncl, (0, 2, 1))                    # (B, L, C) channels-last
    w = jnp.transpose(weight, (2, 1, 0)).reshape(3 * C, H)  # (3C, H), tap-major rows
    b = bias.reshape(1, H)

    tb = _pick_batch_tile(B, L, C, H, jnp.dtype(x_ncl.dtype).itemsize)
    grid = (pl.cdiv(B, tb),)
    compiler_params = pltpu.CompilerParams(
        dimension_semantics=("parallel",),     # megacore: split batch tiles across TCs
        vmem_limit_bytes=32 * 1024 * 1024,
    )

    if mask is None:
        return pl.pallas_call(
            cnn_maxpool_kernel,
            out_shape=jax.ShapeDtypeStruct((B, H), x_ncl.dtype),
            grid=grid,
            in_specs=[
                pl.BlockSpec((tb, L, C), lambda i: (i, 0, 0)),
                pl.BlockSpec((3 * C, H), lambda i: (0, 0)),   # weights stay resident
                pl.BlockSpec((1, H), lambda i: (0, 0)),
            ],
            out_specs=pl.BlockSpec((tb, H), lambda i: (i, 0)),
            compiler_params=compiler_params,
        )(x, w, b)
    else:
        return pl.pallas_call(
            cnn_piecewise_kernel,
            out_shape=jax.ShapeDtypeStruct((B, 3 * H), x_ncl.dtype),
            grid=grid,
            in_specs=[
                pl.BlockSpec((tb, L, C), lambda i: (i, 0, 0)),
                pl.BlockSpec((3 * C, H), lambda i: (0, 0)),
                pl.BlockSpec((1, H), lambda i: (0, 0)),
                pl.BlockSpec((tb, 3, L), lambda i: (i, 0, 0)),
            ],
            out_specs=pl.BlockSpec((tb, 3 * H), lambda i: (i, 0)),
            compiler_params=compiler_params,
        )(x, w, b, mask)


def ref_forward(x_ncl, weight, bias, mask=None):
    """Pure-JAX reference replicating the PyTorch forward exactly."""
    y = jax.lax.conv_general_dilated(
        x_ncl, weight, window_strides=(1,), padding=[(1, 1)],
        dimension_numbers=("NCH", "OIH", "NCH"),
    )
    y = y + bias[None, :, None]
    y = jnp.maximum(y, 0.0)                                # relu(conv)
    if mask is None:
        return jnp.max(y, axis=-1)
    pools = []
    for p in range(3):
        yp = jnp.maximum(y + MINUS * mask[:, p:p + 1, :], 0.0)
        pools.append(jnp.max(yp, axis=-1))
    return jnp.concatenate(pools, axis=1)


if __name__ == "__main__":
    # Small shapes consistent with the module: x is [batch, input_size, sen_len].
    B, C_IN, L, HIDDEN = 2, 4, 16, 32

    key = jax.random.PRNGKey(0)
    kx, kw, kb, km = jax.random.split(key, 4)

    # Deterministic parameter init (matching PyTorch Conv1d default uniform bound).
    bound = 1.0 / (C_IN * 3) ** 0.5
    weight = jax.random.uniform(kw, (HIDDEN, C_IN, 3), jnp.float32, -bound, bound)
    bias = jax.random.uniform(kb, (HIDDEN,), jnp.float32, -bound, bound)

    x = jax.random.normal(kx, (B, C_IN, L), jnp.float32)
    mask = (jax.random.uniform(km, (B, 3, L)) > 0.5).astype(jnp.float32)

    # TODO(synk): nn.Dropout is instantiated in __init__ but never applied in
    # forward, so it is intentionally not implemented.

    # Branch 1: mask=None -> [B, hidden]
    out1 = jax.block_until_ready(cnn_forward(x, weight, bias))
    ref1 = ref_forward(x, weight, bias)
    assert out1.shape == (B, HIDDEN)
    assert jnp.allclose(out1, ref1, atol=1e-5, rtol=1e-5), "maxpool branch mismatch"

    # Branch 2: piece-wise max pooling with mask -> [B, 3*hidden]
    out2 = jax.block_until_ready(cnn_forward(x, weight, bias, mask))
    ref2 = ref_forward(x, weight, bias, mask)
    assert out2.shape == (B, 3 * HIDDEN)
    assert jnp.allclose(out2, ref2, atol=1e-5, rtol=1e-5), "piecewise branch mismatch"

    print("KERNEL_OK")
</pallas_src>

<mosaic_0001>
module attributes {stable_mosaic.version = 11 : i64} {
  func.func @cnn_maxpool_kernel(%arg0: i32, %arg1: memref<2x16x4xf32, #tpu.memory_space<vmem>>, %arg2: memref<12x32xf32, #tpu.memory_space<vmem>>, %arg3: memref<1x32xf32, #tpu.memory_space<vmem>>, %arg4: memref<2x32xf32, #tpu.memory_space<vmem>>) attributes {dimension_semantics = [#tpu.dimension_semantics<parallel>], iteration_bounds = array<i64: 1>, scalar_prefetch = 0 : i64, scratch_operands = 0 : i64, tpu.core_type = #tpu.core_type<tc>, window_params = [{transform_indices = @transform_0, window_bounds = array<i64: 2, 16, 4>}, {pipeline_mode = #tpu.pipeline_mode<synchronous>, transform_indices = @transform_1, window_bounds = array<i64: 12, 32>}, {pipeline_mode = #tpu.pipeline_mode<synchronous>, transform_indices = @transform_2, window_bounds = array<i64: 1, 32>}, {transform_indices = @transform_3, window_bounds = array<i64: 2, 32>}]} {
    %c0 = arith.constant 0 : index
    %c0_0 = arith.constant 0 : index
    %c0_1 = arith.constant 0 : index
    %0 = vector.load %arg1[%c0, %c0_0, %c0_1] : memref<2x16x4xf32, #tpu.memory_space<vmem>>, vector<2x16x4xf32>
    %cst = arith.constant 0.000000e+00 : f32
    %1 = vector.broadcast %cst : f32 to vector<2x1x4xf32>
    %2 = vector.extract_strided_slice %0 {offsets = [0, 0, 0], sizes = [2, 15, 4], strides = [1, 1, 1]} : vector<2x16x4xf32> to vector<2x15x4xf32>
    %3 = tpu.concatenate %1, %2 in 1 : vector<2x1x4xf32>, vector<2x15x4xf32> -> vector<2x16x4xf32>
    %4 = vector.extract_strided_slice %0 {offsets = [0, 1, 0], sizes = [2, 15, 4], strides = [1, 1, 1]} : vector<2x16x4xf32> to vector<2x15x4xf32>
    %5 = tpu.concatenate %4, %1 in 1 : vector<2x15x4xf32>, vector<2x1x4xf32> -> vector<2x16x4xf32>
    %6 = tpu.concatenate %3, %0, %5 in 2 : vector<2x16x4xf32>, vector<2x16x4xf32>, vector<2x16x4xf32> -> vector<2x16x12xf32>
    %7 = vector.shape_cast %6 : vector<2x16x12xf32> to vector<32x12xf32>
    %c0_2 = arith.constant 0 : index
    %c0_3 = arith.constant 0 : index
    %8 = vector.load %arg2[%c0_2, %c0_3] : memref<12x32xf32, #tpu.memory_space<vmem>>, vector<12x32xf32>
    %cst_4 = arith.constant dense<0.000000e+00> : vector<32x32xf32>
    %9 = tpu.matmul %7, %8, %cst_4 {dimension_numbers = #tpu.dot_dimension_numbers<[1], [0], [0], [1], [0, 0, 1, 1], [], []>} : vector<32x12xf32>, vector<12x32xf32>, vector<32x32xf32> -> vector<32x32xf32>
    %10 = vector.shape_cast %9 : vector<32x32xf32> to vector<2x16x32xf32>
    %cst_5 = arith.constant dense<0xFF800000> : vector<2x32xf32>
    %11 = vector.multi_reduction <maximumf>, %10, %cst_5 [1] : vector<2x16x32xf32> to vector<2x32xf32>
    %c0_6 = arith.constant 0 : index
    %c0_7 = arith.constant 0 : index
    %12 = vector.load %arg3[%c0_6, %c0_7] : memref<1x32xf32, #tpu.memory_space<vmem>>, vector<1x32xf32>
    %13 = vector.broadcast %12 : vector<1x32xf32> to vector<2x32xf32>
    %14 = arith.addf %11, %13 : vector<2x32xf32>
    %cst_8 = arith.constant 0.000000e+00 : f32
    %15 = vector.broadcast %cst_8 : f32 to vector<2x32xf32>
    %16 = arith.maximumf %14, %15 : vector<2x32xf32>
    %c0_9 = arith.constant 0 : index
    %c0_10 = arith.constant 0 : index
    %17 = vector.load %arg4[%c0_9, %c0_10] : memref<2x32xf32, #tpu.memory_space<vmem>>, vector<2x32xf32>
    tpu.vector_store %arg4[%c0_9, %c0_10], %16 {strides = array<i32>} : memref<2x32xf32, #tpu.memory_space<vmem>>, vector<2x32xf32>,
    return
  }
  func.func @transform_0(%arg0: i32) -> (i32, i32, i32) {
    %c0_i32 = arith.constant 0 : i32
    %c0_i32_0 = arith.constant 0 : i32
    %c0_i32_1 = arith.constant 0 : i32
    return %arg0, %c0_i32, %c0_i32_0 : i32, i32, i32
  }
  func.func @transform_1(%arg0: i32) -> (i32, i32) {
    %c0_i32 = arith.constant 0 : i32
    %c0_i32_0 = arith.constant 0 : i32
    %c0_i32_1 = arith.constant 0 : i32
    return %c0_i32, %c0_i32_0 : i32, i32
  }
  func.func @transform_2(%arg0: i32) -> (i32, i32) {
    %c0_i32 = arith.constant 0 : i32
    %c0_i32_0 = arith.constant 0 : i32
    %c0_i32_1 = arith.constant 0 : i32
    return %c0_i32, %c0_i32_0 : i32, i32
  }
  func.func @transform_3(%arg0: i32) -> (i32, i32) {
    %c0_i32 = arith.constant 0 : i32
    %c0_i32_0 = arith.constant 0 : i32
    return %arg0, %c0_i32 : i32, i32
  }
}

</mosaic_0001>

<bundles_post_ra>
// kernel: tpu_custom_call.1
= control target key start
LH: loop header
LB: loop body
LE: loop exit
PB: predicated region body
PF: predicated region fallthrough
CT: control target
= control target key end

     0   :  { %vm36_vm0 = vcmask 1046528   ;;  %s223_s18 = smov 4   ;;  %s290_s0 = inlined_call_operand.vmem [shape: f32[2,16,4], index: 0, kind: input, shape index: {}]   ;;  %s291_s1 = inlined_call_operand.vmem [shape: f32[12,32], index: 1, kind: input, shape index: {}]   ;;  %s292_s2 = inlined_call_operand.vmem [shape: f32[1,32], index: 2, kind: input, shape index: {}]   ;;  %s293_s3 = inlined_call_operand.hbm [shape: f32[2,32], index: 3, kind: output, shape index: {}]  }
   0x1   :  { %v17_v0 = vld [vmem:[%s290_s0 + $0x10] sm:$0xff]  ;;  %v18_v1 = vld [vmem:[%s290_s0 + $0x18] sm:$0xff]  ;;  %v15_v2 = vld [vmem:[%s290_s0] sm:$0xff] }
   0x2   :  { %51 = vrot.lane.b32.xlu0 %v17_v0, %s223_s18  ;;  %v40_v3 = vrot.slane %v17_v0, 1  ;;  %v41_v4 = vrot.slane %v18_v1, 1  ;;  %47 = vrot.lane.b32.xlu2 %v15_v2, %s223_s18 }
   0x4   :  { %v42_v5 = vsel %vm36_vm0, %v40_v3, %v41_v4 }
   0x5   :  { %8 = vsyncpa [#allocation3], 0  ;;  %s224_s19 = smov 8   ;;  %v16_v6 = vld [vmem:[%s290_s0 + $0x8] sm:$0xff]  ;;  %v46_v7 = vsel %vm36_vm0, %v41_v4, 0.0  ;;  %v37_v8 = vrot.slane %v15_v2, 1 }
   0x6   :  { %65 = vrot.lane.b32.xlu1 %v42_v5, %s224_s19  ;;  %v38_v9 = vrot.slane %v16_v6, 1  ;;  %v84_v12 = vld [vmem:[%s291_s1 + $0x8] sm:$0xf]  ;;  %vm98_vm1 = vcmask 1043456   ;;  %v83_v13 = vld [vmem:[%s291_s1] sm:$0xff]  ;;  %v27_v14 = vrot.slane %v17_v0, 7 }
   0x7   :  { %188 = vmatpush.msk.msra.mxu2 %vm98_vm1, %v84_v12  ;;  %189 = vmatpush.msk.msra.mxu3 %vm98_vm1, %v84_v12  ;;  %vm23_vm2 = vcmask 1040384   ;;  %vm73_vm3 = vcmask 31744   ;;  %vm78_vm4 = vcmask 64512   ;;  %vm85_vm5 = vcmask 97280   ;;  %v196_v56 = vld [vmem:[%s292_s2] ss:$0 sm:$0xff] }
   0x8   :  { %v39_v10 = vsel %vm36_vm0, %v37_v8, %v38_v9  ;;  %v45_v11 = vsel %vm36_vm0, %v38_v9, 0.0  ;;  %182 = vmatpush.msk.msra.mxu0 %vm98_vm1, %v84_v12  ;;  %187 = vmatpush.msk.msra.mxu1 %vm98_vm1, %v84_v12  ;;  %v35_v15 = vsel %vm23_vm2, 0.0, %v27_v14  ;;  %v28_v18 = vrot.slane %v18_v1, 7  ;;  %s225_s26 = smov [#allocation2]   ;;  %s173_s30 = sshll.u32 %s293_s3, 4  ;;  %s174_s30 = int_to_ptr.hbm [resolvable:$true] %s173_s30 }
   0x9   :  { %191 = vmatpush.msra.mxu2 %v83_v13  ;;  %192 = vmatpush.msra.mxu3 %v83_v13  ;;  %v24_v25 = vrot.slane %v15_v2, 7  ;;  %v25_v26 = vrot.slane %v16_v6, 7  ;;  %vm131_vm6 = vcmask 261120   ;;  %s171_s27 = sshll.u32 %s225_s26, 4  ;;  %vm161_vm7 = vcmask 1041409   ;;  %s172_s27 = int_to_ptr.vmem [resolvable:$true] %s171_s27 }
   0xa   :  { %53 = vrot.lane.b32.xlu0 %v18_v1, %s223_s18  ;;  %49 = vrot.lane.b32.xlu2 %v16_v6, %s223_s18  ;;  %v29_v22 = vsel %vm23_vm2, %v27_v14, %v28_v18  ;;  %vm164_vm8 = vcmask 254976  }
   0xb   :  { %117 = vmatpush.msra.mxu0 %v83_v13  ;;  %190 = vmatpush.msra.mxu1 %v83_v13  ;;  %v34_v29 = vsel %vm23_vm2, 0.0, %v24_v25  ;;  %v26_v31 = vsel %vm23_vm2, %v24_v25, %v25_v26 }
   0xe   :  { %67 = vrot.lane.b32.xlu1 %v46_v7, %s224_s19 }
  0x12   :  { %61 = vrot.lane.b32.xlu0 %v39_v10, %s224_s19 }
  0x16   :  { %63 = vrot.lane.b32.xlu1 %v45_v11, %s224_s19 }
  0x5c   :  { %v48_v21 = vpop.permute.xlu2 %47 }
  0x5d   :  { %v74_v32 = vsel %vm73_vm3, %v34_v29, %v48_v21 }
  0x64   :  { %v50_v30 = vpop.permute.xlu2 %49 }
  0x65   :  { %v75_v34 = vsel %vm73_vm3, %v26_v31, %v50_v30 }
  0x74   :  { %v52_v16 = vpop.permute.xlu0 %51 }
  0x75   :  { %v76_v17 = vsel %vm73_vm3, %v35_v15, %v52_v16 }
  0x78   :  { %v66_v19 = vpop.permute.xlu1 %65 }
  0x79   :  { %v81_v20 = vsel %vm78_vm4, %v76_v17, %v66_v19 }
  0x7a   :  { %185 = vmatmul.msk.f32.vlgmr.msra.gmra.mxu2 %vm85_vm5, %v81_v20 }
  0x7c   :  { %v54_v23 = vpop.permute.xlu0 %53 }
  0x7d   :  { %v77_v24 = vsel %vm73_vm3, %v29_v22, %v54_v23 }
  0x80   :  { %v68_v27 = vpop.permute.xlu1 %67 }
  0x81   :  { %v82_v28 = vsel %vm78_vm4, %v77_v24, %v68_v27 }
  0x82   :  { %186 = vmatmul.msk.f32.vlgmr.msra.gmra.mxu3 %vm85_vm5, %v82_v28 }
  0x84   :  { %v62_v33 = vpop.permute.xlu0 %61 }
  0x85   :  { %v79_v35 = vsel %vm78_vm4, %v74_v32, %v62_v33 }
  0x86   :  { %183 = vmatmul.msk.f32.vlgmr.msra.gmra.mxu0 %vm85_vm5, %v79_v35 }
  0x88   :  { %v64_v36 = vpop.permute.xlu1 %63 }
  0x89   :  { %v80_v37 = vsel %vm78_vm4, %v75_v34, %v64_v36 }
  0x8a   :  { %184 = vmatmul.msk.f32.vlgmr.msra.gmra.mxu1 %vm85_vm5, %v80_v37 }
  0xfd   :  { %v125_v38 = vpop.f32.mrf.mxu2 }
  0xfe   :  { %v141_v41 = vsel %vm131_vm6, %v125_v38, -inf }
 0x103   :  { %v119_v39 = vpop.f32.mrf.mxu0 }
 0x104   :  { %v132_v45 = vsel %vm131_vm6, %v119_v39, -inf }
 0x105   :  { %v128_v40 = vpop.f32.mrf.mxu3 }
 0x106   :  { %v142_v42 = vsel %vm131_vm6, %v128_v40, -inf }
 0x107   :  { %v143_v43 = vmax.f32 %v141_v41, %v142_v42  ;;  %v122_v44 = vpop.f32.mrf.mxu1 }
 0x108   :  { %v133_v46 = vsel %vm131_vm6, %v122_v44, -inf }
 0x109   :  { %v144_v47 = vrot.slane %v143_v43, 4  ;;  %v134_v48 = vmax.f32 %v132_v45, %v133_v46 }
 0x10b   :  { %v145_v49 = vmax.f32 %v143_v43, %v144_v47  ;;  %v135_v50 = vrot.slane %v134_v48, 4 }
 0x10d   :  { %v146_v51 = vrot.slane %v145_v49, 2  ;;  %v136_v52 = vmax.f32 %v134_v48, %v135_v50 }
 0x10f   :  { %v147_v53 = vmax.f32 %v145_v49, %v146_v51  ;;  %v137_v54 = vrot.slane %v136_v52, 2 }
 0x111   :  { %v148_v55 = vrot.slane %v147_v53, 1  ;;  %v138_v57 = vmax.f32 %v136_v52, %v137_v54 }
 0x113   :  { %v149_v58 = vmax.f32 %v147_v53, %v148_v55  ;;  %v139_v59 = vrot.slane %v138_v57, 1 }
 0x115   :  { %v155_v60 = vadd.f32 %v196_v56, %v149_v58  ;;  %v140_v61 = vmax.f32 %v138_v57, %v139_v59 }
 0x117   :  { %v154_v62 = vadd.f32 %v196_v56, %v140_v61  ;;  %v157_v63 = vmax.f32 %v155_v60, 0.0 }
 0x119   :  { %v156_v0 = vmax.f32 %v154_v62, 0.0  ;;  %v160_v1 = vrot.slane %v157_v63, 7 }
 0x11b   :  { %v162_v2 = vsel %vm161_vm7, %v160_v1, %v156_v0 }
 0x11c   :  { %165 = vst.msk [vmem:[#allocation2] sm:$0x3] %vm164_vm8, %v162_v2 }
 0x11d   :  { %176 = dma.vmem_to_hbm [thread:$0]  %s172_s27, 32, %s174_s30, [#allocation3]  }
 0x11e   :  { %221 = dma.done.wait [#allocation3], 32  }
 0x11f   :  { %222 = vsyncadd [#allocation3], 4294967264 }
 0x120   :  { %181 = vsyncpa [#allocation3], 1 }

</bundles_post_ra>
